<compile_context>
chip_gen: v7x
topology: tpu7x:2x2x1
jax: 0.10.0
libtpu: 0.0.40
codegen_flags: <defaults>
</compile_context>

<pallas_src>
import jax
import jax.numpy as jnp
import numpy as np
from jax.experimental import pallas as pl
from jax.experimental.pallas import tpu as pltpu

# ----------------------------- config (small shapes) -------------------------
B = 2           # batch
L = 8           # sequence length of cls_text_sep tokens
LP = 8          # rows of `transform` (output sequence length of bmm)
D = 32          # hidden size (stands in for 768)
N_LAYERS = 12   # self.bert_layer
VOCAB = 50
BL = B * L


# ---------------- fused kernel: embeddings + 12 layers + anchor bmm ----------
def fused_bert_kernel(anchor_ref,            # SMEM (B,) int32   (scalar prefetch)
                      tok_ref, seg_ref,      # VMEM (B*L, 1) int32
                      wemb_ref, semb_ref,    # VMEM (VOCAB, D), (2, D)
                      pos_ref,               # VMEM (B*L, D)  position emb, tiled
                      w_ref, b_ref,          # VMEM (1, D, D), (1, 1, D)  layer l
                      t_ref,                 # VMEM (B, LP, L) transform
                      o_ref,                 # VMEM (1, B, D)  layer l output block
                      h_vmem, trow_vmem):    # scratch (B*L, D), (B, L)
    l = pl.program_id(0)

    # ---- grid step 0: build embeddings and select anchor rows (stay in VMEM) ----
    @pl.when(l == 0)
    def _init():
        # word-embedding lookup as one-hot @ table (MXU-friendly gather)
        tok = tok_ref[...]                                            # (BL, 1) i32
        vocab_ids = jax.lax.broadcasted_iota(jnp.int32, (BL, VOCAB), 1)
        onehot = (vocab_ids == tok).astype(jnp.float32)               # (BL, VOCAB)
        emb_tok = jnp.dot(onehot, wemb_ref[...],
                          preferred_element_type=jnp.float32)         # (BL, D)
        # segment embedding: only 2 segments -> arithmetic blend on the VPU
        seg = seg_ref[...].astype(jnp.float32)                        # (BL, 1)
        e0 = semb_ref[0:1, :]                                         # (1, D)
        e1 = semb_ref[1:2, :]                                         # (1, D)
        emb_seg = e0 + seg * (e1 - e0)                                # (BL, D)
        h_vmem[...] = emb_tok + emb_seg + pos_ref[...]

        # anchor row of `transform` per batch, selected BEFORE any matmul
        rid = jax.lax.broadcasted_iota(jnp.int32, (LP, L), 0)
        rows = []
        for b in range(B):                                            # static loop
            ai = anchor_ref[b]
            rows.append(jnp.sum(jnp.where(rid == ai, t_ref[b], 0.0),
                                axis=0, keepdims=True))               # (1, L)
        trow_vmem[...] = jnp.concatenate(rows, axis=0)                # (B, L)

    # ---- layer l: one batched (B*L, D) @ (D, D) matmul, h carried in VMEM ----
    h_new = jnp.tanh(
        jnp.dot(h_vmem[...], w_ref[0], preferred_element_type=jnp.float32)
        + b_ref[0])                                                   # (BL, D)
    h_vmem[...] = h_new

    # ---- this layer's slice of select_anchor(bmm(transform, cat)) ------------
    # out[l, b, :] = transform[b, anchor_b, :] @ h_l[b]   (no (Lp, C) product)
    chunks = []
    for b in range(B):                                                # static loop
        h_b = h_new[b * L:(b + 1) * L, :]                             # (L, D)
        chunks.append(jnp.dot(trow_vmem[b:b + 1, :], h_b,
                              preferred_element_type=jnp.float32))    # (1, D)
    o_ref[0] = jnp.concatenate(chunks, axis=0)                        # (B, D)


# ----------------------------------- wrapper ----------------------------------
def bert_embedding_forward(params, inputs):
    tokens = inputs["cls_text_sep_indices"].astype(jnp.int32)          # (B, L)
    segments = inputs["cls_text_sep_segment_ids"].astype(jnp.int32)    # (B, L)
    transform = inputs["transform"].astype(jnp.float32)                # (B, LP, L)
    anchor_index = inputs["anchor_index"].astype(jnp.int32)            # (B,)

    tok_col = tokens.reshape(BL, 1)
    seg_col = segments.reshape(BL, 1)
    pos_tiled = jnp.tile(params["pos_emb"], (B, 1))                    # (BL, D)

    out_lbd = pl.pallas_call(
        fused_bert_kernel,
        out_shape=jax.ShapeDtypeStruct((N_LAYERS, B, D), jnp.float32),
        grid_spec=pltpu.PrefetchScalarGridSpec(
            num_scalar_prefetch=1,                 # anchor_index -> SMEM
            grid=(N_LAYERS,),
            in_specs=[
                pl.BlockSpec((BL, 1), lambda l, a: (0, 0)),            # tokens
                pl.BlockSpec((BL, 1), lambda l, a: (0, 0)),            # segments
                pl.BlockSpec((VOCAB, D), lambda l, a: (0, 0)),         # word_emb
                pl.BlockSpec((2, D), lambda l, a: (0, 0)),             # seg_emb
                pl.BlockSpec((BL, D), lambda l, a: (0, 0)),            # pos (tiled)
                pl.BlockSpec((1, D, D), lambda l, a: (l, 0, 0)),       # W[l] streamed
                pl.BlockSpec((1, 1, D), lambda l, a: (l, 0, 0)),       # b[l] streamed
                pl.BlockSpec((B, LP, L), lambda l, a: (0, 0, 0)),      # transform
            ],
            out_specs=pl.BlockSpec((1, B, D), lambda l, a: (l, 0, 0)),
            scratch_shapes=[
                pltpu.VMEM((BL, D), jnp.float32),   # carried hidden state h
                pltpu.VMEM((B, L), jnp.float32),    # anchor rows of transform
            ],
        ),
        compiler_params=pltpu.CompilerParams(
            # layer axis carries h in scratch -> must be sequential
            dimension_semantics=("arbitrary",),
        ),
    )(anchor_index, tok_col, seg_col, params["word_emb"], params["seg_emb"],
      pos_tiled, params["W"], params["b"], transform)

    # out_lbd[l, b, :] is layer l's D-wide slice of the (B, 12*D) selected row,
    # i.e. exactly x.view(B, 12, D) of the original forward.
    return jnp.transpose(out_lbd, (1, 0, 2))


# ------------------------- pure-numpy reference (f64) -------------------------
def reference_forward(params, inputs):
    tokens = np.asarray(inputs["cls_text_sep_indices"])
    segments = np.asarray(inputs["cls_text_sep_segment_ids"])
    transform = np.asarray(inputs["transform"], dtype=np.float64)
    anchor = np.asarray(inputs["anchor_index"])
    wemb = np.asarray(params["word_emb"], dtype=np.float64)
    semb = np.asarray(params["seg_emb"], dtype=np.float64)
    pemb = np.asarray(params["pos_emb"], dtype=np.float64)
    W = np.asarray(params["W"], dtype=np.float64)
    bb = np.asarray(params["b"], dtype=np.float64)

    h = wemb[tokens] + semb[segments] + pemb[None, :, :]               # (B, L, D)
    outs = []
    for l in range(N_LAYERS):
        h = np.tanh(h @ W[l] + bb[l][None, :, :])
        outs.append(h)
    xcat = np.concatenate(outs, axis=-1)                               # (B, L, 12D)
    y = np.matmul(transform, xcat)                                     # (B, LP, 12D)
    sel = y[np.arange(B), anchor, :]                                   # (B, 12D)
    return sel.reshape(B, N_LAYERS, D)


# ------------------------------------- main ------------------------------------
if __name__ == "__main__":
    key = jax.random.PRNGKey(0)
    ks = jax.random.split(key, 10)

    params = {
        "word_emb": 0.02 * jax.random.normal(ks[0], (VOCAB, D), jnp.float32),
        "seg_emb": 0.02 * jax.random.normal(ks[1], (2, D), jnp.float32),
        "pos_emb": 0.02 * jax.random.normal(ks[2], (L, D), jnp.float32),
        "W": 0.1 * jax.random.normal(ks[3], (N_LAYERS, D, D), jnp.float32),
        "b": 0.01 * jax.random.normal(ks[4], (N_LAYERS, 1, D), jnp.float32),
    }

    inputs = {
        "cls_text_sep_indices": jax.random.randint(ks[5], (B, L), 0, VOCAB, jnp.int32),
        "cls_text_sep_segment_ids": jax.random.randint(ks[6], (B, L), 0, 2, jnp.int32),
        "transform": jax.random.normal(ks[7], (B, LP, L), jnp.float32),
        "anchor_index": jax.random.randint(ks[8], (B,), 0, LP, jnp.int32),
    }

    out = jax.block_until_ready(bert_embedding_forward(params, inputs))
    assert out.shape == (B, N_LAYERS, D), out.shape
    assert out.dtype == jnp.float32

    ref = reference_forward(params, inputs)
    err = np.max(np.abs(np.asarray(out, dtype=np.float64) - ref))
    assert np.allclose(np.asarray(out, dtype=np.float64), ref,
                       rtol=1e-3, atol=1e-3), err
    print("KERNEL_OK")
</pallas_src>

<mosaic_0001>
module attributes {stable_mosaic.version = 11 : i64} {
  func.func @fused_bert_kernel(%arg0: i32, %arg1: memref<2xi32, #tpu.memory_space<smem>>, %arg2: memref<16x1xi32, #tpu.memory_space<vmem>>, %arg3: memref<16x1xi32, #tpu.memory_space<vmem>>, %arg4: memref<50x32xf32, #tpu.memory_space<vmem>>, %arg5: memref<2x32xf32, #tpu.memory_space<vmem>>, %arg6: memref<16x32xf32, #tpu.memory_space<vmem>>, %arg7: memref<1x32x32xf32, #tpu.memory_space<vmem>>, %arg8: memref<1x1x32xf32, #tpu.memory_space<vmem>>, %arg9: memref<2x8x8xf32, #tpu.memory_space<vmem>>, %arg10: memref<1x2x32xf32, #tpu.memory_space<vmem>>, %arg11: memref<16x32xf32, #tpu.memory_space<vmem>>, %arg12: memref<2x8xf32, #tpu.memory_space<vmem>>) attributes {dimension_semantics = [#tpu.dimension_semantics<arbitrary>], iteration_bounds = array<i64: 12>, scalar_prefetch = 1 : i64, scratch_operands = 2 : i64, tpu.core_type = #tpu.core_type<tc>, window_params = [{pipeline_mode = #tpu.pipeline_mode<synchronous>, transform_indices = @transform_0, window_bounds = array<i64: 16, 1>}, {pipeline_mode = #tpu.pipeline_mode<synchronous>, transform_indices = @transform_1, window_bounds = array<i64: 16, 1>}, {pipeline_mode = #tpu.pipeline_mode<synchronous>, transform_indices = @transform_2, window_bounds = array<i64: 50, 32>}, {pipeline_mode = #tpu.pipeline_mode<synchronous>, transform_indices = @transform_3, window_bounds = array<i64: 2, 32>}, {pipeline_mode = #tpu.pipeline_mode<synchronous>, transform_indices = @transform_4, window_bounds = array<i64: 16, 32>}, {transform_indices = @transform_5, window_bounds = array<i64: 1, 32, 32>}, {transform_indices = @transform_6, window_bounds = array<i64: 1, 1, 32>}, {pipeline_mode = #tpu.pipeline_mode<synchronous>, transform_indices = @transform_7, window_bounds = array<i64: 2, 8, 8>}, {transform_indices = @transform_8, window_bounds = array<i64: 1, 2, 32>}]} {
    %c0_i32 = arith.constant 0 : i32
    %0 = arith.cmpi eq, %arg0, %c0_i32 : i32
    %1 = arith.extui %0 : i1 to i32
    %c0_i32_0 = arith.constant 0 : i32
    %2 = arith.cmpi ne, %1, %c0_i32_0 : i32
    scf.if %2 {
      %c0_18 = arith.constant 0 : index
      %c0_19 = arith.constant 0 : index
      %23 = vector.load %arg2[%c0_18, %c0_19] : memref<16x1xi32, #tpu.memory_space<vmem>>, vector<16x1xi32>
      %24 = tpu.iota {dimensions = array<i32: 1>} : vector<16x50xi32>
      %25 = vector.broadcast %23 : vector<16x1xi32> to vector<16x50xi32>
      %26 = arith.cmpi eq, %24, %25 : vector<16x50xi32>
      %27 = arith.extui %26 : vector<16x50xi1> to vector<16x50xi32>
      %28 = arith.sitofp %27 : vector<16x50xi32> to vector<16x50xf32>
      %c0_20 = arith.constant 0 : index
      %c0_21 = arith.constant 0 : index
      %29 = vector.load %arg4[%c0_20, %c0_21] : memref<50x32xf32, #tpu.memory_space<vmem>>, vector<50x32xf32>
      %cst_22 = arith.constant dense<0.000000e+00> : vector<16x32xf32>
      %30 = tpu.matmul %28, %29, %cst_22 {dimension_numbers = #tpu.dot_dimension_numbers<[1], [0], [0], [1], [0, 0, 1, 1], [], []>} : vector<16x50xf32>, vector<50x32xf32>, vector<16x32xf32> -> vector<16x32xf32>
      %c0_23 = arith.constant 0 : index
      %c0_24 = arith.constant 0 : index
      %31 = vector.load %arg3[%c0_23, %c0_24] : memref<16x1xi32, #tpu.memory_space<vmem>>, vector<16x1xi32>
      %32 = arith.sitofp %31 : vector<16x1xi32> to vector<16x1xf32>
      %c0_25 = arith.constant 0 : index
      %c0_26 = arith.constant 0 : index
      %33 = vector.load %arg5[%c0_25, %c0_26] : memref<2x32xf32, #tpu.memory_space<vmem>>, vector<1x32xf32>
      %c1_27 = arith.constant 1 : index
      %c0_28 = arith.constant 0 : index
      %34 = vector.load %arg5[%c1_27, %c0_28] : memref<2x32xf32, #tpu.memory_space<vmem>>, vector<1x32xf32>
      %35 = arith.subf %34, %33 : vector<1x32xf32>
      %36 = vector.broadcast %32 : vector<16x1xf32> to vector<16x32xf32>
      %37 = vector.broadcast %35 : vector<1x32xf32> to vector<16x32xf32>
      %38 = arith.mulf %36, %37 : vector<16x32xf32>
      %39 = vector.broadcast %33 : vector<1x32xf32> to vector<16x32xf32>
      %40 = arith.addf %39, %38 : vector<16x32xf32>
      %41 = arith.addf %30, %40 : vector<16x32xf32>
      %c0_29 = arith.constant 0 : index
      %c0_30 = arith.constant 0 : index
      %42 = vector.load %arg6[%c0_29, %c0_30] : memref<16x32xf32, #tpu.memory_space<vmem>>, vector<16x32xf32>
      %43 = arith.addf %41, %42 : vector<16x32xf32>
      %c0_31 = arith.constant 0 : index
      %c0_32 = arith.constant 0 : index
      %44 = vector.load %arg11[%c0_31, %c0_32] : memref<16x32xf32, #tpu.memory_space<vmem>>, vector<16x32xf32>
      tpu.vector_store %arg11[%c0_31, %c0_32], %43 {strides = array<i32>} : memref<16x32xf32, #tpu.memory_space<vmem>>, vector<16x32xf32>,
      %45 = tpu.iota {dimensions = array<i32: 0>} : vector<8x8xi32>
      %c0_33 = arith.constant 0 : index
      %46 = memref.load %arg1[%c0_33] : memref<2xi32, #tpu.memory_space<smem>>
      %47 = vector.broadcast %46 : i32 to vector<8x8xi32>
      %48 = arith.cmpi eq, %45, %47 : vector<8x8xi32>
      %c0_34 = arith.constant 0 : index
      %c0_35 = arith.constant 0 : index
      %c0_36 = arith.constant 0 : index
      %49 = vector.load %arg9[%c0_34, %c0_35, %c0_36] : memref<2x8x8xf32, #tpu.memory_space<vmem>>, vector<1x8x8xf32>
      %50 = vector.shape_cast %49 : vector<1x8x8xf32> to vector<8x8xf32>
      %cst_37 = arith.constant 0.000000e+00 : f32
      %51 = vector.broadcast %cst_37 : f32 to vector<8x8xf32>
      %52 = arith.select %48, %50, %51 : vector<8x8xi1>, vector<8x8xf32>
      %cst_38 = arith.constant dense<0.000000e+00> : vector<8xf32>
      %53 = vector.multi_reduction <add>, %52, %cst_38 [0] : vector<8x8xf32> to vector<8xf32>
      %54 = vector.shape_cast %53 : vector<8xf32> to vector<1x8xf32>
      %c1_39 = arith.constant 1 : index
      %55 = memref.load %arg1[%c1_39] : memref<2xi32, #tpu.memory_space<smem>>
      %56 = vector.broadcast %55 : i32 to vector<8x8xi32>
      %57 = arith.cmpi eq, %45, %56 : vector<8x8xi32>
      %c1_40 = arith.constant 1 : index
      %c0_41 = arith.constant 0 : index
      %c0_42 = arith.constant 0 : index
      %58 = vector.load %arg9[%c1_40, %c0_41, %c0_42] : memref<2x8x8xf32, #tpu.memory_space<vmem>>, vector<1x8x8xf32>
      %59 = vector.shape_cast %58 : vector<1x8x8xf32> to vector<8x8xf32>
      %cst_43 = arith.constant 0.000000e+00 : f32
      %60 = vector.broadcast %cst_43 : f32 to vector<8x8xf32>
      %61 = arith.select %57, %59, %60 : vector<8x8xi1>, vector<8x8xf32>
      %cst_44 = arith.constant dense<0.000000e+00> : vector<8xf32>
      %62 = vector.multi_reduction <add>, %61, %cst_44 [0] : vector<8x8xf32> to vector<8xf32>
      %63 = vector.shape_cast %62 : vector<8xf32> to vector<1x8xf32>
      %64 = tpu.concatenate %54, %63 in 0 : vector<1x8xf32>, vector<1x8xf32> -> vector<2x8xf32>
      %c0_45 = arith.constant 0 : index
      %c0_46 = arith.constant 0 : index
      %65 = vector.load %arg12[%c0_45, %c0_46] : memref<2x8xf32, #tpu.memory_space<vmem>>, vector<2x8xf32>
      tpu.vector_store %arg12[%c0_45, %c0_46], %64 {strides = array<i32>} : memref<2x8xf32, #tpu.memory_space<vmem>>, vector<2x8xf32>,
    } else {
    }
    %c0 = arith.constant 0 : index
    %c0_1 = arith.constant 0 : index
    %3 = vector.load %arg11[%c0, %c0_1] : memref<16x32xf32, #tpu.memory_space<vmem>>, vector<16x32xf32>
    %c0_2 = arith.constant 0 : index
    %c0_3 = arith.constant 0 : index
    %c0_4 = arith.constant 0 : index
    %4 = vector.load %arg7[%c0_2, %c0_3, %c0_4] : memref<1x32x32xf32, #tpu.memory_space<vmem>>, vector<1x32x32xf32>
    %5 = vector.shape_cast %4 : vector<1x32x32xf32> to vector<32x32xf32>
    %cst = arith.constant dense<0.000000e+00> : vector<16x32xf32>
    %6 = tpu.matmul %3, %5, %cst {dimension_numbers = #tpu.dot_dimension_numbers<[1], [0], [0], [1], [0, 0, 1, 1], [], []>} : vector<16x32xf32>, vector<32x32xf32>, vector<16x32xf32> -> vector<16x32xf32>
    %c0_5 = arith.constant 0 : index
    %c0_6 = arith.constant 0 : index
    %c0_7 = arith.constant 0 : index
    %7 = vector.load %arg8[%c0_5, %c0_6, %c0_7] : memref<1x1x32xf32, #tpu.memory_space<vmem>>, vector<1x1x32xf32>
    %8 = vector.shape_cast %7 : vector<1x1x32xf32> to vector<1x32xf32>
    %9 = vector.broadcast %8 : vector<1x32xf32> to vector<16x32xf32>
    %10 = arith.addf %6, %9 : vector<16x32xf32>
    %11 = math.tanh %10 : vector<16x32xf32>
    %c0_8 = arith.constant 0 : index
    %c0_9 = arith.constant 0 : index
    %12 = vector.load %arg11[%c0_8, %c0_9] : memref<16x32xf32, #tpu.memory_space<vmem>>, vector<16x32xf32>
    tpu.vector_store %arg11[%c0_8, %c0_9], %11 {strides = array<i32>} : memref<16x32xf32, #tpu.memory_space<vmem>>, vector<16x32xf32>,
    %13 = vector.extract_strided_slice %11 {offsets = [0, 0], sizes = [8, 32], strides = [1, 1]} : vector<16x32xf32> to vector<8x32xf32>
    %c0_10 = arith.constant 0 : index
    %c0_11 = arith.constant 0 : index
    %14 = vector.load %arg12[%c0_10, %c0_11] : memref<2x8xf32, #tpu.memory_space<vmem>>, vector<1x8xf32>
    %cst_12 = arith.constant dense<0.000000e+00> : vector<1x32xf32>
    %15 = tpu.matmul %14, %13, %cst_12 {dimension_numbers = #tpu.dot_dimension_numbers<[1], [0], [0], [1], [0, 0, 1, 1], [], []>} : vector<1x8xf32>, vector<8x32xf32>, vector<1x32xf32> -> vector<1x32xf32>
    %16 = vector.extract_strided_slice %11 {offsets = [8, 0], sizes = [8, 32], strides = [1, 1]} : vector<16x32xf32> to vector<8x32xf32>
    %c1 = arith.constant 1 : index
    %c0_13 = arith.constant 0 : index
    %17 = vector.load %arg12[%c1, %c0_13] : memref<2x8xf32, #tpu.memory_space<vmem>>, vector<1x8xf32>
    %cst_14 = arith.constant dense<0.000000e+00> : vector<1x32xf32>
    %18 = tpu.matmul %17, %16, %cst_14 {dimension_numbers = #tpu.dot_dimension_numbers<[1], [0], [0], [1], [0, 0, 1, 1], [], []>} : vector<1x8xf32>, vector<8x32xf32>, vector<1x32xf32> -> vector<1x32xf32>
    %19 = tpu.concatenate %15, %18 in 0 : vector<1x32xf32>, vector<1x32xf32> -> vector<2x32xf32>
    %c0_15 = arith.constant 0 : index
    %c0_16 = arith.constant 0 : index
    %c0_17 = arith.constant 0 : index
    %20 = vector.load %arg10[%c0_15, %c0_16, %c0_17] : memref<1x2x32xf32, #tpu.memory_space<vmem>>, vector<1x2x32xf32>
    %21 = vector.shape_cast %20 : vector<1x2x32xf32> to vector<2x32xf32>
    %22 = vector.shape_cast %19 : vector<2x32xf32> to vector<1x2x32xf32>
    tpu.vector_store %arg10[%c0_15, %c0_16, %c0_17], %22 {strides = array<i32>} : memref<1x2x32xf32, #tpu.memory_space<vmem>>, vector<1x2x32xf32>,
    return
  }
  func.func @transform_0(%arg0: i32, %arg1: memref<2xi32, #tpu.memory_space<smem>>) -> (i32, i32) {
    %c0_i32 = arith.constant 0 : i32
    %c0_i32_0 = arith.constant 0 : i32
    %c0_i32_1 = arith.constant 0 : i32
    return %c0_i32, %c0_i32_0 : i32, i32
  }
  func.func @transform_1(%arg0: i32, %arg1: memref<2xi32, #tpu.memory_space<smem>>) -> (i32, i32) {
    %c0_i32 = arith.constant 0 : i32
    %c0_i32_0 = arith.constant 0 : i32
    %c0_i32_1 = arith.constant 0 : i32
    return %c0_i32, %c0_i32_0 : i32, i32
  }
  func.func @transform_2(%arg0: i32, %arg1: memref<2xi32, #tpu.memory_space<smem>>) -> (i32, i32) {
    %c0_i32 = arith.constant 0 : i32
    %c0_i32_0 = arith.constant 0 : i32
    %c0_i32_1 = arith.constant 0 : i32
    return %c0_i32, %c0_i32_0 : i32, i32
  }
  func.func @transform_3(%arg0: i32, %arg1: memref<2xi32, #tpu.memory_space<smem>>) -> (i32, i32) {
    %c0_i32 = arith.constant 0 : i32
    %c0_i32_0 = arith.constant 0 : i32
    %c0_i32_1 = arith.constant 0 : i32
    return %c0_i32, %c0_i32_0 : i32, i32
  }
  func.func @transform_4(%arg0: i32, %arg1: memref<2xi32, #tpu.memory_space<smem>>) -> (i32, i32) {
    %c0_i32 = arith.constant 0 : i32
    %c0_i32_0 = arith.constant 0 : i32
    %c0_i32_1 = arith.constant 0 : i32
    return %c0_i32, %c0_i32_0 : i32, i32
  }
  func.func @transform_5(%arg0: i32, %arg1: memref<2xi32, #tpu.memory_space<smem>>) -> (i32, i32, i32) {
    %c0_i32 = arith.constant 0 : i32
    %c0_i32_0 = arith.constant 0 : i32
    %c0_i32_1 = arith.constant 0 : i32
    return %arg0, %c0_i32, %c0_i32_0 : i32, i32, i32
  }
  func.func @transform_6(%arg0: i32, %arg1: memref<2xi32, #tpu.memory_space<smem>>) -> (i32, i32, i32) {
    %c0_i32 = arith.constant 0 : i32
    %c0_i32_0 = arith.constant 0 : i32
    %c0_i32_1 = arith.constant 0 : i32
    return %arg0, %c0_i32, %c0_i32_0 : i32, i32, i32
  }
  func.func @transform_7(%arg0: i32, %arg1: memref<2xi32, #tpu.memory_space<smem>>) -> (i32, i32, i32) {
    %c0_i32 = arith.constant 0 : i32
    %c0_i32_0 = arith.constant 0 : i32
    %c0_i32_1 = arith.constant 0 : i32
    %c0_i32_2 = arith.constant 0 : i32
    return %c0_i32, %c0_i32_0, %c0_i32_1 : i32, i32, i32
  }
  func.func @transform_8(%arg0: i32, %arg1: memref<2xi32, #tpu.memory_space<smem>>) -> (i32, i32, i32) {
    %c0_i32 = arith.constant 0 : i32
    %c0_i32_0 = arith.constant 0 : i32
    %c0_i32_1 = arith.constant 0 : i32
    return %arg0, %c0_i32, %c0_i32_0 : i32, i32, i32
  }
}

</mosaic_0001>

<bundles_post_ra>
// kernel: tpu_custom_call.1
= control target key start
LH: loop header
LB: loop body
LE: loop exit
PB: predicated region body
PF: predicated region fallthrough
CT: control target
= control target key end

     0   :  { %s1456_s0 = inlined_call_operand.vmem [shape: s32[2], index: 0, kind: input, shape index: {}]   ;;  %s1457_s1 = inlined_call_operand.vmem [shape: s32[16,1], index: 1, kind: input, shape index: {}]   ;;  %s1458_s2 = inlined_call_operand.vmem [shape: s32[16,1], index: 2, kind: input, shape index: {}]   ;;  %s1459_s3 = inlined_call_operand.vmem [shape: f32[50,32], index: 3, kind: input, shape index: {}]   ;;  %s1460_s4 = inlined_call_operand.vmem [shape: f32[2,32], index: 4, kind: input, shape index: {}]   ;;  %s1461_s5 = inlined_call_operand.vmem [shape: f32[16,32], index: 5, kind: input, shape index: {}]   ;;  %s1462_s6 = inlined_call_operand.hbm [shape: f32[12,32,32], index: 6, kind: input, shape index: {}]   ;;  %s1463_s7 = inlined_call_operand.vmem [shape: f32[12,1,32], index: 7, kind: input, shape index: {}]   ;;  %s1464_s8 = inlined_call_operand.vmem [shape: f32[2,8,8], index: 8, kind: input, shape index: {}]   ;;  %s1465_s9 = inlined_call_operand.hbm [shape: f32[12,2,32], index: 9, kind: output, shape index: {}]  }
   0x1   :  { %1467 = sst [smem:[#allocation14_spill]] %s1462_s6  ;;  %s14_s11 = sshll.u32 %s1456_s0, 4  ;;  %s15_s11 = int_to_ptr.vmem [resolvable:$true] %s14_s11 }
   0x2   :  { %s1037_s12 = scalar_lea.vmem %s15_s11, 16  ;;  %p1042_p1 = scmp.lt.s32.totalorder %s15_s11, %s15_s11 }
   0x3   :  { %p1038_p0 = scmp.ne.s32.totalorder %s15_s11, %s1037_s12  ;;  %p1043_p2 = scmp.lt.s32.totalorder %s1037_s12, %s1037_s12 }
   0x5   :  { %p1044_p3 = por %p1043_p2, %p1042_p1 }
   0x7   :  { %p1045_p4 = pnand %p1044_p3, %p1038_p0 }
   0x9   :  { %1048 = shalt.err (!%p1045_p4)  }
   0xa   :  { %s1149_s13 = smov [#allocation5]  }
   0xb   :  { %17 = dma.vmem_to_smem %s15_s11, 16, %s1149_s13, [#allocation4] }
   0xc   :  { %1123 = dma.done.wait [#allocation4], 16 }
   0xd   :  { %1124 = vsyncadd [#allocation4], 4294967280 }
   0xe   :  { %19 = sfence }
   0xf   :  { %20 = vsyncpa [#allocation7], 0 }
  0x10   :  { %22 = vsyncpa [#allocation7 + $0x1], 0 }
  0x11   :  { %23 = vsyncpa [#allocation8], 0 }
  0x12   :  { %25 = vsyncpa [#allocation8 + $0x1], 0  ;;  %s1211_s14 = smov 0   ;;  %s1213_s0 = smov 0  }
  0x13   :  { %s1215_s15 = smov 0   ;;  %s1217_s16 = smov 0  }
  0x14 LB: > { %s1232_s17 = sadd.s32 4294967295, %s1147_s16   ;;  %s874_s18 = sadd.s32 4294967294, %s1147_s16   ;;  %s1147_s16 = sphi %s1217_s16, %s1482_s16   ;;  %s1143_s15 = sphi %s1215_s15, %s1481_s15   ;;  %s1139_s0 = sphi %s1213_s0, %s1480_s0   ;;  %s1135_s14 = sphi %s1211_s14, %s1479_s14  }
  0x15   : > { %s1236_s19 = sadd.s32 1, %s1147_s16   ;;  %s143_s20 = sadd.s32 1, %s1143_s15 }
  0x16   : > { %s140_s21 = ssub.s32 %s1147_s16, %s1236_s19  ;;  %p150_p5 = scmp.ne.s32.totalorder %s1143_s15, %s1139_s0 }
  0x17   : > { %p141_p6 = scmp.eq.s32.totalorder %s140_s21, 0  ;;  %p151_p7 = scmp.eq.s32.totalorder %s1147_s16, 0 }
  0x18   : > { %p156_p8 = scmp.ne.s32.totalorder %s1139_s0, %s1135_s14  ;;  %p157_p9 = scmp.eq.s32.totalorder %s1232_s17, 0 }
  0x19   : > { %s1248_s22 = scalar_select %p141_p6, %s1143_s15, %s143_s20  }
  0x1a   : > { %p1250_p10 = por %p151_p7, %p150_p5  ;;  %p1254_p11 = por %p157_p9, %p156_p8 }
  0x1b   : > { %1468 = sst [smem:[#allocation13_spill]] %s1248_s22  ;;  %p227_p12 = scmp.eq.s32.totalorder %s1232_s17, 11 }
  0x1c   : > { %p233_p13 = scmp.eq.s32.totalorder %s874_s18, 11  ;;  %p990_p0 = scmp.lt.s32.totalorder %s1147_s16, 12 }
  0x1d   : > { %p1260_p1 = por %p227_p12, %p150_p5  ;;  %s271_s27 = sand.u32 1, %s1143_s15  }
  0x1e   : > { %p1264_p2 = por %p233_p13, %p156_p8  ;;  %s900_s28 = sshll.u32 %s1147_s16, 9 }
  0x1f   : > { %s1471_s25 = scalar_select %p1260_p1, 1, 0 }
  0x20   : > { %s1472_s26 = scalar_select %p1264_p2, 1, 0 }
  0x21   : > { %s877_s29 = sshll.u32 %s271_s27, 5  ;;  %s1473_s6 = sld [smem:[#allocation14_spill]] }
  0x22   : > { %s275_s12 = scalar_lea.vmem [#allocation6], %s877_s29  ;;  %p1277_p3 = pnand %p990_p0, %p1250_p10 }
  0x23   : > { %s282_s13 = sshll.u32 %s275_s12, 4  ;;  %s1283_s20 = scalar_lea.sflag [#allocation7], %s271_s27  ;;  %s1281_s13 = int_to_ptr.vmem [resolvable:$true] %s282_s13 }
  0x24   : > { %p1051_p5 = pneg %p1277_p3 }
  0x27   : > { %s1273_s11 = scalar_lea.hbm %s1473_s6, %s900_s28  ;;  %s1054_s29 = scalar_lea.hbm %s1473_s6, 6144 }
  0x28   : > { %s1049_s21 = scalar_lea.hbm %s1273_s11, 512  ;;  %p1055_p8 = scmp.lt.u32.totalorder %s1273_s11, %s1473_s6 }
  0x29   : > { %p1050_p4 = scmp.ne.s32.totalorder %s1273_s11, %s1049_s21  ;;  %p1056_p9 = scmp.lt.u32.totalorder %s1054_s29, %s1049_s21 }
  0x2a   : > { %p1058_p12 = scmp.lt.u32.totalorder %s1049_s21, %s1273_s11 }
  0x2b   : > { %p1052_p6 = pnand %p1051_p5, %p1050_p4  ;;  %p1057_p10 = por %p1056_p9, %p1055_p8 }
  0x2d   : > { %p1053_p7 = pneg %p1052_p6  ;;  %p1059_p13 = por %p1058_p12, %p1057_p10 }
  0x2f   : > { %p1060_p0 = pnand %p1059_p13, %p1053_p7 }
  0x31   : > { %1063 = shalt.err (!%p1060_p0)
}
  0x32   : > { %s1064_s27 = scalar_lea.vmem %s1281_s13, 512  ;;  %s1150_s12 = smov [#allocation6]  }
  0x33   : > { %p1065_p4 = scmp.ne.s32.totalorder %s1281_s13, %s1064_s27  ;;  %s1069_s28 = sshll.u32 %s1150_s12, 4  ;;  %s1070_s28 = int_to_ptr.vmem [resolvable:$false] %s1069_s28 }
  0x34   : > { %s1071_s23 = scalar_lea.vmem %s1070_s28, 1024  ;;  %p1072_p1 = scmp.lt.s32.totalorder %s1281_s13, %s1070_s28 }
  0x35   : > { %p1067_p6 = pnand %p1065_p4, %p1051_p5  ;;  %p1073_p8 = scmp.lt.s32.totalorder %s1071_s23, %s1064_s27 }
  0x37   : > { %p1068_p2 = pneg %p1067_p6  ;;  %p1074_p9 = por %p1073_p8, %p1072_p1 }
  0x39   : > { %p1075_p10 = pnand %p1074_p9, %p1068_p2 }
  0x3b   : > { %1078 = shalt.err (!%p1075_p10)
}
  0x3c   : > { %s1151_s21 = smov 128   ;;  %s1152_s29 = smov 8  }
  0x3d   : > { %985 = dma.hbm_to_vmem [thread:$0]  (!%p1277_p3), %s1273_s11, 512, %s1281_s13, %s1283_s20, %s1151_s21, %s1151_s21, %s1152_s29  }
  0x3e   : > { %p880_p5 = scmp.ge.s32.totalorder %s1147_s16, 1  ;;  %p296_p7 = scmp.lt.s32.totalorder %s1147_s16, 13 }
  0x40   : > { %p297_p12 = pnand %p880_p5, %p296_p7 }
  0x41   : > { %s1314_s30 = sand.u32 (!%p297_p12), 1, %s1139_s0  }
  0x42   : > { %300 = sbr.rel (%p297_p12) target bundleno = 902 (0x386), region = 52  ;;  %s881_s10 = sshll.u32 (!%p297_p12), %s1314_s30, 5 }
  0x43   : > { %s303_s27 = scalar_lea.sflag (!%p297_p12), [#allocation7], %s1314_s30  ;;  %s1318_s12 = scalar_lea.vmem (!%p297_p12), [#allocation6], %s881_s10 }
  0x49   : > { %1126 = dma.done.wait (%p1254_p11), %s303_s27, 512  }
  0x4a   : > { %1128 = vsyncadd (%p1254_p11), %s303_s27, 4294966784  ;;  %s882_s11 = sshll.u32 %s1314_s30, 1  ;;  %p342_p1 = scmp.lt.s32.totalorder %s1232_s17, 11 }
  0x4b   : > { %s1333_s23 = scalar_lea.vmem [#allocation9], %s882_s11  ;;  %p883_p2 = scmp.ne.s32.totalorder %s1232_s17, 0 }
  0x4c   : > { %s1327_s13 = scalar_select %p342_p1, %s1232_s17, 11 }
  0x4d   : > { %348 = sbr.rel (%p883_p2) target bundleno = 431 (0x1af), region = 60  ;;  %v349_v0 = vld [vmem:[%s1457_s1] sm:$0xff] (!%p883_p2)  ;;  %s496_s27 = sld [smem:[#allocation5]] (!%p883_p2)  ;;  %v1153_v2 = vmov (!%p883_p2), 0   ;;  %v366_v3 = vld [vmem:[%s1459_s3 + $0x8] sm:$0xff] (!%p883_p2)  ;;  %v367_v4 = vld [vmem:[%s1459_s3 + $0x10] sm:$0xff] (!%p883_p2)  ;;  %v351_v6 = vlaneseq (!%p883_p2) }
  0x4e   : > { %v365_v1 = vld [vmem:[%s1459_s3] sm:$0xff] (!%p883_p2)  ;;  %1031 = vset.pattern.permute.xlu0 (!%p883_p2), %v1153_v2  ;;  %v368_v5 = vld [vmem:[%s1459_s3 + $0x18] sm:$0xff] (!%p883_p2)  ;;  %s889_s21 = sld [smem:[#allocation5 + $0x1]] (!%p883_p2)  ;;  %1032 = vset.pattern.permute.xlu1 (!%p883_p2), %v1153_v2  ;;  %v350_v9 = vld [vmem:[%s1457_s1 + $0x8] sm:$0xff] (!%p883_p2)  ;;  %vm501_vm0 = vcmask (!%p883_p2), 64512   ;;  %vm408_vm3 = vcmask (!%p883_p2), 1041408  }
  0x4f   : > { %354 = vperm.xlu0 (!%p883_p2), %1031, %v349_v0   ;;  %v958_v7 = vpack.c.bf16 (!%p883_p2), %v366_v3, %v365_v1  ;;  %v962_v8 = vpack.c.bf16 (!%p883_p2), %v368_v5, %v367_v4  ;;  %v1354_v10 = vshrl.u32 (!%p883_p2), %v351_v6, 7  ;;  %v369_v11 = vld [vmem:[%s1459_s3 + $0x20] sm:$0xff] (!%p883_p2)  ;;  %v370_v12 = vld [vmem:[%s1459_s3 + $0x28] sm:$0xff] (!%p883_p2)  ;;  %v371_v27 = vld [vmem:[%s1459_s3 + $0x30] sm:$0x3] (!%p883_p2)  ;;  %vm522_vm4 = vcmask (!%p883_p2), 1040384  }
  0x50   : > { %v499_v13 = vld [vmem:[%s1464_s8] sm:$0xff] (!%p883_p2)  ;;  %v890_v15 = vld [vmem:[%s1464_s8 + $0x8] sm:$0xff] (!%p883_p2)  ;;  %v966_v16 = vpack.c.bf16 (!%p883_p2), %v370_v12, %v369_v11  ;;  %vm524_vm5 = vcmask (!%p883_p2), 58368   ;;  %v352_v40 = vand.u32 (!%p883_p2), 127, %v351_v6  ;;  %vm401_vm6 = vcmask (!%p883_p2), 408576  }
  0x51   : > { %959 = vmatprep.subr.bf16.mxu0 (!%p883_p2), %v958_v7  ;;  %v372_v19 = vld [vmem:[%s1458_s2] sm:$0xff] (!%p883_p2)  ;;  %v373_v20 = vld [vmem:[%s1458_s2 + $0x8] sm:$0xff] (!%p883_p2)  ;;  %v1154_v42 = vmov (!%p883_p2), 0.0   ;;  %v391_v50 = vsub.s32 (!%p883_p2), 0, %v1354_v10  ;;  %vm491_vm9 = vcmask (!%p883_p2), 261120  }
  0x52   : > { %961 = vmatpush3.bf16.msra.mxu0 (!%p883_p2), %v958_v7  ;;  %v374_v23 = vcvt.s32.f32 (!%p883_p2), %v372_v19  ;;  %v375_v28 = vcvt.s32.f32 (!%p883_p2), %v373_v20  ;;  %v376_v46 = vld [vmem:[%s1460_s4] sm:$0x1] (!%p883_p2)  ;;  %v377_v47 = vld [vmem:[%s1460_s4 + $0x1] sm:$0x1] (!%p883_p2)  ;;  %v488_v58 = vld [vmem:[%s1461_s5 + $0x8] sm:$0xff] (!%p883_p2) }
  0x53   : > { %357 = vperm.xlu0 (!%p883_p2), %1031, %v350_v9   ;;  %963 = vmatprep.subr.bf16.mxu0 (!%p883_p2), %v962_v8  ;;  %v497_v14 = vstv (!%p883_p2), %s496_s27  ;;  %v378_v49 = vsub.f32 (!%p883_p2), %v377_v47, %v376_v46  ;;  %v398_v54 = vrot.slane (!%p883_p2), %v376_v46, %v391_v50  ;;  %v487_v62 = vld [vmem:[%s1461_s5] sm:$0xff] (!%p883_p2) }
  0x54   : > { %vm498_vm1 = vcmp.eq.s32.totalorder %v1354_v10, %v497_v14  ;;  %v510_v17 = vstv %s889_s21  ;;  %381 = vperm.xlu1 %1032, %v374_v23  }
  0x55   : > { %v500_v18 = vsel %vm498_vm1, %v499_v13, 0.0  ;;  %vm511_vm2 = vcmp.eq.s32.totalorder %v1354_v10, %v510_v17  ;;  %v392_v51 = vrot.slane %v378_v49, %v391_v50 }
  0x56   : > { %965 = vmatpush3.bf16.msra.mxu0 %v962_v8  ;;  %v502_v21 = vsel %vm501_vm0, %v500_v18, 0.0  ;;  %v514_v22 = vsel %vm511_vm2, %v890_v15, 0.0 }
  0x57   : > { %v503_v24 = vrot.slane %v502_v21, 4  ;;  %v515_v25 = vsel %vm501_vm0, %v514_v22, 0.0  ;;  %967 = vmatprep.subr.bf16.mxu0 %v966_v16 }
  0x58   : > { %v516_v26 = vrot.slane %v515_v25, 4  ;;  %386 = vperm.xlu1 %1032, %v375_v28  }
  0x59   : > { %v504_v29 = vadd.f32 %v503_v24, %v502_v21 }
  0x5a   : > { %v517_v30 = vadd.f32 %v516_v26, %v515_v25  ;;  %969 = vmatpush3.bf16.msra.mxu0 %v966_v16 }
  0x5b   : > { %v505_v31 = vrot.slane %v504_v29, 2  ;;  %932 = vmatprep.subr.msk.mxu0 %vm408_vm3, %v371_v27 }
  0x5c   : > { %v518_v32 = vrot.slane %v517_v30, 2 }
  0x5d   : > { %v506_v33 = vadd.f32 %v505_v31, %v504_v29 }
  0x5e   : > { %v519_v34 = vadd.f32 %v518_v32, %v517_v30  ;;  %933 = vmatpush3.msk.msra.mxu0 %vm408_vm3, %v371_v27 }
  0x5f   : > { %v507_v35 = vrot.slane %v506_v33, 1 }
  0x60   : > { %v520_v36 = vrot.slane %v519_v34, 1 }
  0x61   : > { %v508_v37 = vadd.f32 %v507_v35, %v506_v33 }
  0x62   : > { %v521_v38 = vadd.f32 %v520_v36, %v519_v34 }
  0x64   : > { %v523_v39 = vsel %vm522_vm4, %v508_v37, %v521_v38 }
  0x65   : > { %525 = vst.msk [vmem:[#allocation3] sm:$0x3] %vm524_vm5, %v523_v39 }
  0xce   : > { %v355_v41 = vpop.permute.xlu0 %354 }
  0xcf   : > { %vm359_vm7 = vcmp.eq.s32.totalorder %v352_v40, %v355_v41 }
  0xd0   : > { %v884_v43 = vsel %vm359_vm7, 1.0, %v1154_v42 }
  0xd1   : > { %934 = vmatprep.mubr.msk.f32.mxu0 %vm401_vm6, %v884_v43 }
  0xd2   : > { %v358_v44 = vpop.permute.xlu0 %357 }
  0xd3   : > { %vm360_vm8 = vcmp.eq.s32.totalorder %v352_v40, %v358_v44  ;;  %v382_v48 = vpop.permute.xlu1 %381 }
  0xd4   : > { %v885_v45 = vsel %vm360_vm8, 1.0, %v1154_v42  ;;  %v393_v55 = vmul.f32 %v392_v51, %v382_v48 }
  0xd5   : > { %935 = vmatmul.mubr.msk.f32.vlgmr.msra.gmra.mrb[0].mxu0 %vm401_vm6, %v885_v45 }
  0xd6   : > { %v399_v59 = vadd.f32 %v398_v54, %v393_v55 }
  0xd7   : > { %v387_v52 = vpop.permute.xlu1 %386 }
  0xd8   : > { %v394_v53 = vmul.f32 %v392_v51, %v387_v52 }
  0xda   : > { %v400_v56 = vadd.f32 %v398_v54, %v394_v53 }
 0x1a8   : > { %v936_v57 = vpop.f32.mrb[0].mxu0 }
 0x1a9   : > { %v484_v60 = vadd.f32 %v936_v57, %v400_v56  ;;  %v478_v61 = vpop.f32.mrb[1].mxu0 }
 0x1aa   : > { %v479_v63 = vadd.f32 %v478_v61, %v399_v59 }
 0x1ab   : > { %v490_v0 = vadd.f32 %v488_v58, %v484_v60 }
 0x1ac   : > { %v489_v1 = vadd.f32 %v487_v62, %v479_v63 }
 0x1ad   : > { %493 = vst.msk [vmem:[#allocation2 + $0x8] sm:$0xff] %vm491_vm9, %v490_v0 }
 0x1ae   : > { %492 = vst.msk [vmem:[#allocation2] sm:$0xff] %vm491_vm9, %v489_v1 }
 0x1af PF: > { %v528_v2 = vld [vmem:[%s1318_s12] sm:$0xff]  ;;  %v529_v3 = vld [vmem:[%s1318_s12 + $0x8] sm:$0xff]  ;;  %v530_v4 = vld [vmem:[%s1318_s12 + $0x10] sm:$0xff]  ;;  %vm539_vm10 = vcmask 261120   ;;  %v1155_v10 = vmov 0.0   ;;  %vm1156_vm11 = vmmov 0  }
 0x1b0   : > { %v970_v5 = vpack.c.bf16 %v529_v3, %v528_v2  ;;  %v531_v6 = vld [vmem:[%s1318_s12 + $0x18] sm:$0xff]  ;;  %948 = vmatprep.subr.mxu1 %v1155_v10  ;;  %950 = vmatprep.mubr.msk.f32.mxu1 %vm1156_vm11, %v1155_v10  ;;  %s1475_s12 = scalar_lea.vmem %s1463_s7, %s1327_s13  ;;  %vm626_vm12 = vcmask 64512   ;;  %s897_s13 = sshll.u32 %s1232_s17, 5  ;;  %vm777_vm13 = vcmask 1040384   ;;  %vm779_vm14 = vcmask 254976  }
 0x1b1   : > { %v974_v8 = vpack.c.bf16 %v531_v6, %v530_v4  ;;  %v891_v11 = vld [vmem:[%s1475_s12] ss:$0 sm:$0xff]  ;;  %v625_v17 = vld [vmem:[#allocation3] sm:$0x1]  ;;  %v700_v19 = vld [vmem:[#allocation3 + $0x1] sm:$0x1]  ;;  %s1412_s18 = scalar_lea.hbm %s1465_s9, %s897_s13 }
 0x1b2   : > { %971 = vmatprep.subr.bf16.mxu0 %v970_v5  ;;  %s795_s21 = sshll.u32 %s1333_s23, 4  ;;  %s782_s20 = scalar_lea.sflag [#allocation8], %s1314_s30  ;;  %s1414_s21 = int_to_ptr.vmem [resolvable:$true] %s795_s21 }
 0x1b3   : > { %973 = vmatpush3.bf16.msra.mxu0 %v970_v5  ;;  %s1079_s17 = scalar_lea.vmem %s1414_s21, 32  ;;  %p1476_p3 = scmp.ne.s32.totalorder %s1471_s25, 0 }
 0x1b4   : > { %975 = vmatprep.subr.bf16.mxu0 %v974_v8  ;;  %v527_v9 = vld [vmem:[#allocation2 + $0x8] sm:$0xff]  ;;  %p1080_p11 = scmp.ne.s32.totalorder %s1414_s21, %s1079_s17  ;;  %s1157_s24 = smov [#allocation9]  }
 0x1b5   : > { %v526_v7 = vld [vmem:[#allocation2] sm:$0xff]  ;;  %s1083_s29 = sshll.u32 %s1157_s24, 4  ;;  %s1084_s29 = int_to_ptr.vmem [resolvable:$false] %s1083_s29 }
 0x1b6   : > { %945 = vmatprep.mubr.msk.f32.mxu0 %vm539_vm10, %v526_v7  ;;  %p1081_p13 = pnand %p1080_p11, %p1476_p3  ;;  %s1085_s6 = scalar_lea.vmem %s1084_s29, 64 }
 0x1b7   : > { %977 = vmatpush3.bf16.msra.mxu0 %v974_v8  ;;  %p1086_p4 = scmp.lt.s32.totalorder %s1414_s21, %s1084_s29  ;;  %p1087_p6 = scmp.lt.s32.totalorder %s1085_s6, %s1079_s17 }
 0x1b8   : > { %p1082_p0 = pneg %p1081_p13 }
 0x1b9   : > { %p1088_p8 = por %p1087_p6, %p1086_p4 }
 0x1ba   : > { %946 = vmatmul.mubr.msk.f32.vlgmr.msra.gmra.mrb[0].mxu0 %vm539_vm10, %v527_v9 }
 0x1bb   : > { %p1089_p9 = pnand %p1088_p8, %p1082_p0 }
 0x28d   : > { %v947_v12 = vpop.f32.mrb[0].mxu0 }
 0x28e   : > { %v618_v13 = vadd.f32 %v947_v12, %v891_v11  ;;  %v612_v14 = vpop.f32.mrb[1].mxu0 }
 0x28f   : > { %v613_v15 = vadd.f32 %v891_v11, %v612_v14 }
 0x290   : > { %1033 = vtanh.f32 %v618_v13 }
 0x291   : > { %1035 = vtanh.f32 %v613_v15 }
 0x29a   : > { %v1034_v16 = vpop.eup %1033 }
 0x29b   : > { %v1036_v18 = vpop.eup %1035  ;;  %624 = vst.msk [vmem:[#allocation2 + $0x8] sm:$0xff] %vm539_vm10, %v1034_v16 }
 0x29c   : > { %623 = vst.msk [vmem:[#allocation2] sm:$0xff] %vm539_vm10, %v1036_v18  ;;  %949 = vmatpush3.msra.mxu1 %v1036_v18 }
 0x29d   : > { %951 = vmatmul.mubr.msk.f32.vlgmr.msra.gmra.mrb[0].mxu1 %vm626_vm12, %v625_v17  ;;  %953 = vmatprep.subr.mxu1 %v1155_v10 }
 0x29e   : > { %954 = vmatpush3.msra.mxu1 %v1034_v16  ;;  %955 = vmatprep.mubr.msk.f32.mxu1 %vm1156_vm11, %v1155_v10 }
 0x2a1   : > { %956 = vmatmul.mubr.msk.f32.vlgmr.msra.gmra.mrb[2].mxu1 %vm626_vm12, %v700_v19 }
 0x370   : > { %v696_v20 = vpop.f32.mrb[0].mxu1 }
 0x371   : > { %v952_v21 = vpop.f32.mrb[1].mxu1 }
 0x374   : > { %v770_v22 = vpop.f32.mrb[2].mxu1 }
 0x375   : > { %v775_v23 = vrot.slane %v770_v22, 7  ;;  %v957_v24 = vpop.f32.mrb[3].mxu1 }
 0x377   : > { %v778_v25 = vsel %vm777_vm13, %v696_v20, %v775_v23 }
 0x378   : > { %780 = vst.msk [vmem:[%s1333_s23] sm:$0x3] %vm779_vm14, %v778_v25 }
 0x379   : > { %1092 = shalt.err (!%p1089_p9)
}
 0x37a   : > { %s1093_s30 = scalar_lea.hbm %s1412_s18, 32  ;;  %s1097_s10 = scalar_lea.hbm %s1465_s9, 384 }
 0x37b   : > { %p1094_p10 = scmp.ne.s32.totalorder %s1412_s18, %s1093_s30  ;;  %p1098_p12 = scmp.lt.u32.totalorder %s1412_s18, %s1465_s9 }
 0x37c   : > { %p1099_p1 = scmp.lt.u32.totalorder %s1097_s10, %s1093_s30  ;;  %p1101_p11 = scmp.lt.u32.totalorder %s1093_s30, %s1412_s18 }
 0x37d   : > { %p1095_p5 = pnand %p1094_p10, %p1476_p3 }
 0x37e   : > { %p1100_p2 = por %p1099_p1, %p1098_p12 }
 0x37f   : > { %p1096_p7 = pneg %p1095_p5 }
 0x380   : > { %p1102_p13 = por %p1101_p11, %p1100_p2 }
 0x382   : > { %p1103_p0 = pnand %p1102_p13, %p1096_p7 }
 0x384   : > { %1106 = shalt.err (!%p1103_p0)
}
 0x385   : > { %980 = dma.vmem_to_hbm [thread:$0]  (%p1476_p3), %s1414_s21, 32, %s1412_s18, %s782_s20  }
 0x386 PF: > { %p991_p4 = scmp.ge.s32.totalorder %s1147_s16, 2  ;;  %s807_s13 = sand.u32 1, %s1135_s14  }
 0x387   : > { %p1477_p6 = scmp.ne.s32.totalorder %s1472_s26, 0  ;;  %s808_s11 = scalar_lea.sflag [#allocation8], %s807_s13 }
 0x389   : > { %p987_p8 = pnand %p991_p4, %p1477_p6 }
 0x38b   : > { %1130 = dma.done.wait (!%p987_p8), %s808_s11, 32  }
 0x38c   : > { %1132 = vsyncadd (!%p987_p8), %s808_s11, 4294967264  ;;  %s1478_s28 = sld [smem:[#allocation13_spill]]  ;;  %p28_p9 = scmp.ge.s32.totalorder %s1236_s19, 14  }
 0x38d   : > { %s1479_s14 = smov %s1139_s0  ;;  %s1480_s0 = smov %s1143_s15 }
 0x38e   : > { %s1482_s16 = smov %s1236_s19  ;;  %30 = sbr.rel (!%p28_p9) target bundleno = 20 (0x14), region = 105 }
 0x392   : > { %s1481_s15 = smov %s1478_s28 }
 0x395   :  { %813 = vsyncpa [#allocation7], 1 }
 0x396   :  { %815 = vsyncpa [#allocation7 + $0x1], 1 }
 0x397   :  { %816 = vsyncpa [#allocation8], 1 }
 0x398   :  { %818 = vsyncpa [#allocation8 + $0x1], 1 }

</bundles_post_ra>
